<compile_context>
chip_gen: v7x
topology: tpu7x:2x2x1
jax: 0.10.0
libtpu: 0.0.40
codegen_flags: <defaults>
</compile_context>

<pallas_src>
import functools

import jax
import jax.numpy as jnp
from jax.experimental import pallas as pl
from jax.experimental.pallas import tpu as pltpu

_MIB = 1024 * 1024
_STATIC_UNROLL_MAX = 16   # chunk loops longer than this use lax.fori_loop


def _round_up(x, m):
    return ((x + m - 1) // m) * m


def _vmem_budget_bytes():
    """~75% of physical VMEM (v5e/v6e: 128 MiB, v7x: 64 MiB per TensorCore)."""
    cap = 64 * _MIB
    try:
        cap = int(getattr(pltpu.get_tpu_info(), "vmem_capacity_bytes", cap))
    except Exception:
        pass
    return (3 * cap) // 4


# ---------------------------------------------------------------------------
# Pass 1: fused input projection for BOTH directions (one big MXU matmul).
#   x:(rows, E) @ [wih_f | wih_b]:(E, 8H) + [b_f | b_b]  ->  gx:(rows, 8H)
# ---------------------------------------------------------------------------
def _input_proj_kernel(x_ref, w_ref, b_ref, gx_ref):
    y = jnp.dot(x_ref[...], w_ref[...], preferred_element_type=jnp.float32)
    gx_ref[...] = (y + b_ref[...]).astype(gx_ref.dtype)


def _input_projection(x2d, w_cat, b_cat, *, gx_dtype, row_tile, budget):
    tb, e = x2d.shape
    g8 = w_cat.shape[1]
    xb = x2d.dtype.itemsize
    wb = w_cat.dtype.itemsize
    gb = jnp.dtype(gx_dtype).itemsize

    rt = min(row_tile, tb)
    if rt < tb:
        rt = max(8, (rt // 8) * 8)            # (8,128) sublane rule when tiling

    def est(r):                                # double-buffered in/out + weights
        return 2 * r * e * xb + 2 * r * g8 * gb + 2 * e * g8 * wb + 2 * g8 * 4

    while rt > 64 and est(rt) > budget:
        rt = max(64, ((rt // 2) // 8) * 8)

    vmem_limit = min(budget, max(2 * est(rt), 32 * _MIB))
    return pl.pallas_call(
        _input_proj_kernel,
        out_shape=jax.ShapeDtypeStruct((tb, g8), gx_dtype),
        grid=(pl.cdiv(tb, rt),),
        in_specs=[pl.BlockSpec((rt, e), lambda i: (i, 0)),
                  pl.BlockSpec((e, g8), lambda i: (0, 0)),
                  pl.BlockSpec((1, g8), lambda i: (0, 0))],
        out_specs=pl.BlockSpec((rt, g8), lambda i: (i, 0)),
        compiler_params=pltpu.CompilerParams(
            dimension_semantics=("parallel",),
            vmem_limit_bytes=int(vmem_limit)),
    )(x2d, w_cat, b_cat)


# ---------------------------------------------------------------------------
# Pass 2: bidirectional recurrence over streamed gate chunks + final fc.
# ---------------------------------------------------------------------------
def _bilstm_kernel(lens_ref, gxf_ref, gxb_ref, whh_f_ref, whh_b_ref,
                   wfc_ref, bfc_ref, out_ref,
                   hf_ref, cf_ref, hb_ref, cb_ref, *, T_pad, CT, H, unroll):
    c_idx = pl.program_id(1)
    n_chunks = pl.num_programs(1)

    @pl.when(c_idx == 0)
    def _init():
        hf_ref[...] = jnp.zeros_like(hf_ref)
        cf_ref[...] = jnp.zeros_like(cf_ref)
        hb_ref[...] = jnp.zeros_like(hb_ref)
        cb_ref[...] = jnp.zeros_like(cb_ref)

    # Loop-invariant loads hoisted out of the chunk loop.
    lens = lens_ref[...]                       # (bb, 1) int32
    whh_f = whh_f_ref[...]                     # (H, 4H)
    whh_b = whh_b_ref[...]
    mm_dtype = whh_f.dtype                     # MXU operand dtype (f32 / bf16)

    def load_step(ref, idx):
        # (bb, ct, 4H) ref -> per-step (bb, 4H) gate slice; static idx is a
        # free view, dynamic idx (fori path) is a sublane-dim dynamic slice.
        return ref[:, pl.ds(idx, 1), :][:, 0, :].astype(jnp.float32)

    def cell(gx, h, c, whh):
        # gx already holds x@wih + (b_ih + b_hh); per-step critical path is a
        # single (bb,H)x(H,4H) matmul with f32 accumulation.
        gates = gx + jnp.dot(h.astype(mm_dtype), whh,
                             preferred_element_type=jnp.float32)   # (bb,4H) f32
        i = jax.nn.sigmoid(gates[:, 0 * H:1 * H])
        f = jax.nn.sigmoid(gates[:, 1 * H:2 * H])
        g = jnp.tanh(gates[:, 2 * H:3 * H])
        o = jax.nn.sigmoid(gates[:, 3 * H:4 * H])
        c_new = f * c + i * g
        h_new = o * jnp.tanh(c_new)
        return h_new, c_new

    t0 = c_idx * CT

    def step(j, carry):
        # fwd step t_f and bwd step T_pad-1-t_f are independent -> their
        # matmuls / EUP work overlap within one iteration.
        h_f, c_f, h_b, c_b = carry
        t_f = t0 + j
        t_b = (T_pad - 1) - t_f
        hf_new, cf_new = cell(load_step(gxf_ref, j), h_f, c_f, whh_f)
        hb_new, cb_new = cell(load_step(gxb_ref, CT - 1 - j), h_b, c_b, whh_b)
        vf = t_f < lens                        # freeze past length (packed-LSTM)
        vb = t_b < lens
        h_f = jnp.where(vf, hf_new, h_f)
        c_f = jnp.where(vf, cf_new, c_f)
        h_b = jnp.where(vb, hb_new, h_b)
        c_b = jnp.where(vb, cb_new, c_b)
        return h_f, c_f, h_b, c_b

    carry = (hf_ref[...], cf_ref[...], hb_ref[...], cb_ref[...])
    if CT <= _STATIC_UNROLL_MAX:
        for j in range(CT):                    # short chunk: static unroll
            carry = step(j, carry)
    else:                                      # long chunk: bound live ranges
        carry = jax.lax.fori_loop(0, CT, step, carry, unroll=unroll)
    h_f, c_f, h_b, c_b = carry

    hf_ref[...] = h_f
    cf_ref[...] = c_f
    hb_ref[...] = h_b
    cb_ref[...] = c_b

    @pl.when(c_idx == n_chunks - 1)
    def _finish():
        hidden = jnp.concatenate([h_f, h_b], axis=1)       # (bb, 2H)
        out = (jnp.dot(hidden.astype(mm_dtype), wfc_ref[...],
                       preferred_element_type=jnp.float32) + bfc_ref[...])
        out_ref[...] = out.astype(out_ref.dtype)


def lstm_classifier_forward(text, lengths, params, *,
                            time_chunk=32, row_tile=1024,
                            matmul_dtype=jnp.float32,
                            gx_dtype=jnp.float32,
                            gx_buffers=2):
    """text: (B, T) int32 token ids, lengths: (B,) int32 -> (B, C) float32.

    matmul_dtype=bf16 (MXU operands, f32 accumulation) and gx_dtype=bf16 (gate
    slab storage) are the recommended perf settings on v5e/v6e/v7x.
    """
    B, T = text.shape
    E = params["embedding"].shape[1]
    H = params["whh_f"].shape[0]
    C = params["wfc"].shape[1]
    assert H % 32 == 0, "fused gx lane split requires hidden_dim % 32 == 0"

    budget = _vmem_budget_bytes()
    gx_bytes = jnp.dtype(gx_dtype).itemsize
    mm_bytes = jnp.dtype(matmul_dtype).itemsize

    # Batch block: shard the serial recurrence across v7x's 2 TensorCores when
    # B allows (bb must stay a multiple of 8 whenever it tiles B).
    bb = B // 2 if (B >= 16 and B % 16 == 0) else B
    nb = B // bb

    # Time chunk: multiple of 8 (sublane rule for the (bb, ct, 4H) gx block),
    # capped so the buffered gx streams + weights + scratch fit the VMEM budget.
    ct = min(_round_up(max(int(time_chunk), 1), 8), _round_up(T, 8))

    def p2_est(ct_):
        return (2 * gx_buffers * bb * ct_ * 4 * H * gx_bytes   # gx fwd+bwd streams
                + 4 * H * 4 * H * mm_bytes                     # whh_f/whh_b (x2 buf)
                + 2 * (2 * H * C + C) * mm_bytes               # fc weights
                + 4 * bb * H * 4                               # h/c scratch
                + 2 * bb * (4 * C + 4))                        # out + lengths

    while ct > 8 and p2_est(ct) > budget:
        ct = max(8, ((ct // 2) // 8) * 8)

    t_pad = _round_up(T, ct)
    n_chunks = t_pad // ct

    # ---- embedding gather (eval-mode dropout == identity), batch-major -----
    # TODO(synk): the gather could be fused into pass 1 (scalar-prefetched ids
    # + in-kernel DMA gather from an HBM-resident table) to drop one HBM pass.
    emb = jnp.take(params["embedding"], text, axis=0).astype(jnp.float32)  # (B,T,E)
    if t_pad != T:
        emb = jnp.pad(emb, ((0, 0), (0, t_pad - T), (0, 0)))   # no transpose
    x2d = emb.reshape(B * t_pad, E).astype(matmul_dtype)

    # ---- pass 1: one fused input projection for both directions ------------
    w_cat = jnp.concatenate([params["wih_f"], params["wih_b"]],
                            axis=1).astype(matmul_dtype)        # (E, 8H)
    b_cat = jnp.concatenate([params["b_f"], params["b_b"]],
                            axis=1).astype(jnp.float32)         # (1, 8H)
    gx2d = _input_projection(x2d, w_cat, b_cat, gx_dtype=gx_dtype,
                             row_tile=row_tile, budget=budget)
    gx = gx2d.reshape(B, t_pad, 8 * H)   # lanes [:4H]=forward, [4H:]=backward

    # ---- pass 2: streamed recurrence + fc -----------------------------------
    lens2d = lengths.astype(jnp.int32).reshape(B, 1)
    whh_f = params["whh_f"].astype(matmul_dtype)
    whh_b = params["whh_b"].astype(matmul_dtype)
    wfc = params["wfc"].astype(matmul_dtype)
    bfc = params["bfc"].astype(jnp.float32)

    kernel = functools.partial(_bilstm_kernel, T_pad=t_pad, CT=ct, H=H,
                               unroll=min(8, ct))
    const = lambda b, c: (0, 0)

    def gx_spec(index_map):
        kwargs = {}
        if gx_buffers != 2:
            kwargs["pipeline_mode"] = pl.Buffered(gx_buffers)
        return pl.BlockSpec((bb, ct, 4 * H), index_map, **kwargs)

    vmem_limit = min(budget, max(2 * p2_est(ct), 32 * _MIB))

    return pl.pallas_call(
        kernel,
        out_shape=jax.ShapeDtypeStruct((B, C), jnp.float32),
        grid_spec=pltpu.PrefetchScalarGridSpec(
            num_scalar_prefetch=0,
            grid=(nb, n_chunks),
            in_specs=[
                pl.BlockSpec((bb, 1), lambda b, c: (b, 0)),                # lengths
                gx_spec(lambda b, c: (b, c, 0)),                           # gx fwd half
                gx_spec(lambda b, c, n=n_chunks: (b, n - 1 - c, 1)),       # gx bwd half (rev)
                pl.BlockSpec((H, 4 * H), const),                           # whh_f
                pl.BlockSpec((H, 4 * H), const),                           # whh_b
                pl.BlockSpec((2 * H, C), const),                           # wfc
                pl.BlockSpec((1, C), const),                               # bfc
            ],
            out_specs=pl.BlockSpec((bb, C), lambda b, c: (b, 0)),
            scratch_shapes=[pltpu.VMEM((bb, H), jnp.float32)] * 4,         # hf,cf,hb,cb
        ),
        compiler_params=pltpu.CompilerParams(
            dimension_semantics=("parallel", "arbitrary"),
            vmem_limit_bytes=int(vmem_limit)),
    )(lens2d, gx, gx, whh_f, whh_b, wfc, bfc)


# ---------------------------------------------------------------------------
# Parameters + pure-JAX reference (PyTorch packed bi-LSTM semantics).
# ---------------------------------------------------------------------------
def init_params(key, vocab_size, embed_dim, hidden_dim, num_classes):
    ks = jax.random.split(key, 11)
    k_lstm = 1.0 / jnp.sqrt(hidden_dim)
    k_fc = 1.0 / jnp.sqrt(2 * hidden_dim)

    def u(kk, shape, scale):
        return jax.random.uniform(kk, shape, jnp.float32, -scale, scale)

    return dict(
        embedding=jax.random.normal(ks[0], (vocab_size, embed_dim), jnp.float32),
        # PyTorch stores weight_ih_l0 as (4H, E) / weight_hh_l0 as (4H, H);
        # we keep them transposed so the kernels compute x @ W.
        wih_f=u(ks[1], (embed_dim, 4 * hidden_dim), k_lstm),
        whh_f=u(ks[2], (hidden_dim, 4 * hidden_dim), k_lstm),
        b_f=u(ks[3], (1, 4 * hidden_dim), k_lstm)
            + u(ks[4], (1, 4 * hidden_dim), k_lstm),   # b_ih + b_hh (forward)
        wih_b=u(ks[5], (embed_dim, 4 * hidden_dim), k_lstm),
        whh_b=u(ks[6], (hidden_dim, 4 * hidden_dim), k_lstm),
        b_b=u(ks[7], (1, 4 * hidden_dim), k_lstm)
            + u(ks[8], (1, 4 * hidden_dim), k_lstm),   # b_ih + b_hh (reverse)
        wfc=u(ks[9], (2 * hidden_dim, num_classes), k_fc),
        bfc=u(ks[10], (1, num_classes), k_fc),
    )


def reference_forward(text, lengths, params):
    emb = jnp.take(params["embedding"], text, axis=0).astype(jnp.float32)
    B, T, _ = emb.shape
    H = params["whh_f"].shape[0]
    mask = (jnp.arange(T)[None, :] < lengths[:, None]).astype(jnp.float32)

    def cell(x_t, h, c, wih, whh, b):
        g = x_t @ wih + h @ whh + b
        i = jax.nn.sigmoid(g[:, :H])
        f = jax.nn.sigmoid(g[:, H:2 * H])
        gg = jnp.tanh(g[:, 2 * H:3 * H])
        o = jax.nn.sigmoid(g[:, 3 * H:])
        c_new = f * c + i * gg
        return o * jnp.tanh(c_new), c_new

    h = c = jnp.zeros((B, H), jnp.float32)
    for t in range(T):
        hn, cn = cell(emb[:, t], h, c, params["wih_f"], params["whh_f"], params["b_f"])
        m = mask[:, t:t + 1]
        h = m * hn + (1 - m) * h
        c = m * cn + (1 - m) * c
    h_f = h

    h = c = jnp.zeros((B, H), jnp.float32)
    for t in range(T - 1, -1, -1):
        hn, cn = cell(emb[:, t], h, c, params["wih_b"], params["whh_b"], params["b_b"])
        m = mask[:, t:t + 1]
        h = m * hn + (1 - m) * h
        c = m * cn + (1 - m) * c
    h_b = h

    hidden = jnp.concatenate([h_f, h_b], axis=1)
    return hidden @ params["wfc"] + params["bfc"]


if __name__ == "__main__":
    VOCAB, EMBED, HIDDEN, CLASSES = 50, 16, 32, 4

    key = jax.random.PRNGKey(0)
    k_param, k_text, k_text2, k_text3, k_len3 = jax.random.split(key, 5)
    params = init_params(k_param, VOCAB, EMBED, HIDDEN, CLASSES)

    # (1) B=2, T=8: single chunk, f32 everywhere -> tight check vs reference.
    B, T = 2, 8
    text = jax.random.randint(k_text, (B, T), 0, VOCAB, dtype=jnp.int32)
    lengths = jnp.array([T, 5], dtype=jnp.int32)           # variable-length batch
    ref = reference_forward(text, lengths, params)
    out = jax.block_until_ready(lstm_classifier_forward(text, lengths, params))
    assert out.shape == (B, CLASSES)
    assert jnp.allclose(out, ref, atol=1e-4, rtol=1e-4), (out, ref)

    # (2) longer sequence with T padding + multi-chunk streaming (T=20 -> T_pad=24).
    T2 = 20
    text2 = jax.random.randint(k_text2, (B, T2), 0, VOCAB, dtype=jnp.int32)
    lengths2 = jnp.array([T2, 13], dtype=jnp.int32)
    ref2 = reference_forward(text2, lengths2, params)
    out2 = jax.block_until_ready(
        lstm_classifier_forward(text2, lengths2, params, time_chunk=8))
    assert jnp.allclose(out2, ref2, atol=5e-4, rtol=5e-4), (out2, ref2)

    # (3) B=16 (batch axis actually tiles: bb=8, nb=2) and time_chunk=24
    #     (> 16 -> fori_loop chunk-loop path).
    T3, B3 = 40, 16
    text3 = jax.random.randint(k_text3, (B3, T3), 0, VOCAB, dtype=jnp.int32)
    lengths3 = jax.random.randint(k_len3, (B3,), 1, T3 + 1, dtype=jnp.int32)
    ref3 = reference_forward(text3, lengths3, params)
    out3 = jax.block_until_ready(
        lstm_classifier_forward(text3, lengths3, params, time_chunk=24))
    assert out3.shape == (B3, CLASSES)
    assert jnp.allclose(out3, ref3, atol=1e-3, rtol=1e-3), (out3, ref3)

    # (4) bf16 MXU operands + bf16 gx slab (recommended perf path on v5e/v6e/v7x):
    #     f32 accumulation and f32 gate math, so only operand/storage rounding
    #     differs -> loose tolerance.
    out_bf16 = jax.block_until_ready(
        lstm_classifier_forward(text, lengths, params,
                                matmul_dtype=jnp.bfloat16,
                                gx_dtype=jnp.bfloat16))
    assert jnp.allclose(out_bf16, ref, atol=2e-1), (out_bf16, ref)

    print("KERNEL_OK")
</pallas_src>

<mosaic_0001>
module attributes {stable_mosaic.version = 11 : i64} {
  func.func @_input_proj_kernel(%arg0: i32, %arg1: memref<16x16xf32, #tpu.memory_space<vmem>>, %arg2: memref<16x256xf32, #tpu.memory_space<vmem>>, %arg3: memref<1x256xf32, #tpu.memory_space<vmem>>, %arg4: memref<16x256xf32, #tpu.memory_space<vmem>>) attributes {dimension_semantics = [#tpu.dimension_semantics<parallel>], iteration_bounds = array<i64: 1>, scalar_prefetch = 0 : i64, scratch_operands = 0 : i64, tpu.core_type = #tpu.core_type<tc>, window_params = [{transform_indices = @transform_0, window_bounds = array<i64: 16, 16>}, {pipeline_mode = #tpu.pipeline_mode<synchronous>, transform_indices = @transform_1, window_bounds = array<i64: 16, 256>}, {pipeline_mode = #tpu.pipeline_mode<synchronous>, transform_indices = @transform_2, window_bounds = array<i64: 1, 256>}, {transform_indices = @transform_3, window_bounds = array<i64: 16, 256>}]} {
    %c0 = arith.constant 0 : index
    %c0_0 = arith.constant 0 : index
    %0 = vector.load %arg1[%c0, %c0_0] : memref<16x16xf32, #tpu.memory_space<vmem>>, vector<16x16xf32>
    %c0_1 = arith.constant 0 : index
    %c0_2 = arith.constant 0 : index
    %1 = vector.load %arg2[%c0_1, %c0_2] : memref<16x256xf32, #tpu.memory_space<vmem>>, vector<16x256xf32>
    %cst = arith.constant dense<0.000000e+00> : vector<16x256xf32>
    %2 = tpu.matmul %0, %1, %cst {dimension_numbers = #tpu.dot_dimension_numbers<[1], [0], [0], [1], [0, 0, 1, 1], [], []>} : vector<16x16xf32>, vector<16x256xf32>, vector<16x256xf32> -> vector<16x256xf32>
    %c0_3 = arith.constant 0 : index
    %c0_4 = arith.constant 0 : index
    %3 = vector.load %arg3[%c0_3, %c0_4] : memref<1x256xf32, #tpu.memory_space<vmem>>, vector<1x256xf32>
    %4 = vector.broadcast %3 : vector<1x256xf32> to vector<16x256xf32>
    %5 = arith.addf %2, %4 : vector<16x256xf32>
    %c0_5 = arith.constant 0 : index
    %c0_6 = arith.constant 0 : index
    %6 = vector.load %arg4[%c0_5, %c0_6] : memref<16x256xf32, #tpu.memory_space<vmem>>, vector<16x256xf32>
    tpu.vector_store %arg4[%c0_5, %c0_6], %5 {strides = array<i32>} : memref<16x256xf32, #tpu.memory_space<vmem>>, vector<16x256xf32>,
    return
  }
  func.func @transform_0(%arg0: i32) -> (i32, i32) {
    %c0_i32 = arith.constant 0 : i32
    %c0_i32_0 = arith.constant 0 : i32
    return %arg0, %c0_i32 : i32, i32
  }
  func.func @transform_1(%arg0: i32) -> (i32, i32) {
    %c0_i32 = arith.constant 0 : i32
    %c0_i32_0 = arith.constant 0 : i32
    %c0_i32_1 = arith.constant 0 : i32
    return %c0_i32, %c0_i32_0 : i32, i32
  }
  func.func @transform_2(%arg0: i32) -> (i32, i32) {
    %c0_i32 = arith.constant 0 : i32
    %c0_i32_0 = arith.constant 0 : i32
    %c0_i32_1 = arith.constant 0 : i32
    return %c0_i32, %c0_i32_0 : i32, i32
  }
  func.func @transform_3(%arg0: i32) -> (i32, i32) {
    %c0_i32 = arith.constant 0 : i32
    %c0_i32_0 = arith.constant 0 : i32
    return %arg0, %c0_i32 : i32, i32
  }
}

</mosaic_0001>

<bundles_post_ra>
// kernel: tpu_custom_call.1
= control target key start
LH: loop header
LB: loop body
LE: loop exit
PB: predicated region body
PF: predicated region fallthrough
CT: control target
= control target key end

     0   :  { %8 = vsyncpa [#allocation3], 0  ;;  %s328_s0 = inlined_call_operand.hbm [shape: f32[16,16], index: 0, kind: input, shape index: {}]   ;;  %s329_s1 = inlined_call_operand.hbm [shape: f32[16,256], index: 1, kind: input, shape index: {}]   ;;  %s330_s2 = inlined_call_operand.vmem [shape: f32[1,256], index: 2, kind: input, shape index: {}]   ;;  %s331_s3 = inlined_call_operand.hbm [shape: f32[16,256], index: 3, kind: output, shape index: {}]  }
   0x1   :  { %9 = vsyncpa [#allocation6], 0 }
   0x2   :  { %10 = vsyncpa [#allocation4], 0  ;;  %s255_s12 = smov [#allocation2]   ;;  %s183_s16 = scalar_lea.hbm %s328_s0, 256 }
   0x3   :  { %s16_s13 = sshll.u32 %s255_s12, 4  ;;  %p184_p0 = scmp.ne.s32.totalorder %s328_s0, %s183_s16  ;;  %s17_s13 = int_to_ptr.vmem [resolvable:$true] %s16_s13 }
   0x4   :  { %p187_p1 = scmp.lt.u32.totalorder %s183_s16, %s328_s0 }
   0x6   :  { %p189_p2 = pnand %p187_p1, %p184_p0 }
   0x8   :  { %192 = shalt.err (!%p189_p2)
}
   0x9   :  { %s193_s21 = scalar_lea.vmem %s17_s13, 256  ;;  %p198_p4 = scmp.lt.s32.totalorder %s17_s13, %s17_s13 }
   0xa   :  { %p194_p3 = scmp.ne.s32.totalorder %s17_s13, %s193_s21  ;;  %p199_p5 = scmp.lt.s32.totalorder %s193_s21, %s193_s21 }
   0xc   :  { %p200_p6 = por %p199_p5, %p198_p4 }
   0xe   :  { %p201_p7 = pnand %p200_p6, %p194_p3 }
  0x10   :  { %204 = shalt.err (!%p201_p7)
}
  0x11   :  { %s256_s22 = smov 128   ;;  %s257_s23 = smov 8  }
  0x12   :  { %22 = dma.hbm_to_vmem [thread:$0]  %s328_s0, 256, %s17_s13, [#allocation3], %s256_s22, %s256_s22, %s257_s23  }
  0x13   :  { %s258_s26 = smov [#allocation5]   ;;  %s205_s30 = scalar_lea.hbm %s329_s1, 512 }
  0x14   :  { %s28_s27 = sshll.u32 %s258_s26, 4  ;;  %p206_p8 = scmp.ne.s32.totalorder %s329_s1, %s205_s30  ;;  %s29_s27 = int_to_ptr.vmem [resolvable:$true] %s28_s27 }
  0x15   :  { %p209_p9 = scmp.lt.u32.totalorder %s205_s30, %s329_s1 }
  0x17   :  { %p211_p10 = pnand %p209_p9, %p206_p8 }
  0x19   :  { %214 = shalt.err (!%p211_p10)
}
  0x1a   :  { %s215_s8 = scalar_lea.vmem %s29_s27, 512  ;;  %p220_p12 = scmp.lt.s32.totalorder %s29_s27, %s29_s27 }
  0x1b   :  { %p216_p11 = scmp.ne.s32.totalorder %s29_s27, %s215_s8  ;;  %p221_p13 = scmp.lt.s32.totalorder %s215_s8, %s215_s8 }
  0x1d   :  { %p222_p0 = por %p221_p13, %p220_p12 }
  0x1f   :  { %p223_p1 = pnand %p222_p0, %p216_p11 }
  0x21   :  { %226 = shalt.err (!%p223_p1)
}
  0x22   :  { %s259_s0 = smov 256   ;;  %s260_s9 = smov 16  }
  0x23   :  { %34 = dma.hbm_to_vmem [thread:$0]  %s329_s1, 512, %s29_s27, [#allocation6], %s259_s0, %s259_s0, %s260_s9  }
  0x24   :  { %249 = dma.done.wait [#allocation3], 256  }
  0x25   :  { %250 = vsyncadd [#allocation3], 4294967040 }
  0x26   :  { %251 = dma.done.wait [#allocation6], 512  }
  0x27   :  { %252 = vsyncadd [#allocation6], 4294966784  ;;  %v261_v0 = vmov 0.0   ;;  %v46_v1 = vld [vmem:[#allocation5 + $0x8] sm:$0xff]  ;;  %v48_v2 = vld [vmem:[#allocation5 + $0x18] sm:$0xff]  ;;  %vm61_vm0 = vcmask 130048   ;;  %v51_v9 = vlaneseq }
  0x28   :  { %132 = vmatprep.mubr.f32.mxu0 %v261_v0  ;;  %138 = vmatprep.mubr.f32.mxu1 %v261_v0  ;;  %v45_v3 = vld [vmem:[#allocation5] sm:$0xff]  ;;  %v169_v4 = vpack.c.bf16 %v48_v2, %v46_v1  ;;  %v47_v5 = vld [vmem:[#allocation5 + $0x10] sm:$0xff]  ;;  %v44_v8 = vld [vmem:[#allocation2 + $0x8] sm:$0xff]  ;;  %s262_s13 = smov [#allocation7]  }
  0x29   :  { %v171_v6 = vpack.c.bf16 %v47_v5, %v45_v3  ;;  %v43_v7 = vld [vmem:[#allocation2] sm:$0xff]  ;;  %v52_v10 = vshrl.u32 %v51_v9, 7  ;;  %s154_s14 = sshll.u32 %s262_s13, 4  ;;  %s155_s14 = int_to_ptr.vmem [resolvable:$true] %s154_s14 }
  0x2a   :  { %170 = vmatprep.subr.bf16.mxu0 %v169_v4  ;;  %173 = vmatprep.subr.bf16.mxu1 %v169_v4  ;;  %v49_v12 = vld [vmem:[%s330_s2] sm:$0x3]  ;;  %s227_s15 = scalar_lea.vmem %s155_s14, 512  ;;  %p232_p3 = scmp.lt.s32.totalorder %s155_s14, %s155_s14 }
  0x2b   :  { %172 = vmatpush1.bf16.msra.mxu0 %v171_v6  ;;  %174 = vmatpush1.bf16.msra.mxu1 %v171_v6  ;;  %v53_v11 = vsub.s32 0, %v52_v10  ;;  %v57_v13 = vsub.s32 1, %v52_v10  ;;  %p228_p2 = scmp.ne.s32.totalorder %s155_s14, %s227_s15  ;;  %p233_p4 = scmp.lt.s32.totalorder %s227_s15, %s227_s15 }
  0x2d   :  { %v54_v14 = vrot.slane %v49_v12, %v53_v11  ;;  %v58_v15 = vrot.slane %v49_v12, %v57_v13  ;;  %p234_p5 = por %p233_p4, %p232_p3 }
  0x2e   :  { %167 = vmatmul.mubr.msk.f32.vlgmr.msra.gmra.mrb[0].mxu0 %vm61_vm0, %v43_v7  ;;  %168 = vmatmul.mubr.msk.f32.vlgmr.msra.gmra.mrb[0].mxu1 %vm61_vm0, %v44_v8 }
  0x2f   :  { %p235_p6 = pnand %p234_p5, %p228_p2 }
 0x101   :  { %v134_v16 = vpop.f32.mrb[0].mxu0  ;;  %v140_v17 = vpop.f32.mrb[0].mxu1 }
 0x102   :  { %v135_v18 = vadd.f32 %v134_v16, %v54_v14  ;;  %v141_v19 = vadd.f32 %v140_v17, %v54_v14  ;;  %v136_v20 = vpop.f32.mrb[1].mxu0  ;;  %v142_v21 = vpop.f32.mrb[1].mxu1 }
 0x103   :  { %v137_v22 = vadd.f32 %v136_v20, %v58_v15  ;;  %v143_v23 = vadd.f32 %v142_v21, %v58_v15 }
 0x104   :  { %145 = vst [vmem:[#allocation7] sm:$0xff] %v135_v18  ;;  %147 = vst [vmem:[#allocation7 + $0x10] sm:$0xff] %v141_v19 }
 0x105   :  { %146 = vst [vmem:[#allocation7 + $0x8] sm:$0xff] %v137_v22  ;;  %148 = vst [vmem:[#allocation7 + $0x18] sm:$0xff] %v143_v23 }
 0x106   :  { %238 = shalt.err (!%p235_p6)
}
 0x107   :  { %s239_s17 = scalar_lea.hbm %s331_s3, 512 }
 0x108   :  { %p240_p7 = scmp.ne.s32.totalorder %s331_s3, %s239_s17  ;;  %p243_p8 = scmp.lt.u32.totalorder %s239_s17, %s331_s3 }
 0x10a   :  { %p245_p9 = pnand %p243_p8, %p240_p7 }
 0x10c   :  { %248 = shalt.err (!%p245_p9)
}
 0x10d   :  { %160 = dma.vmem_to_hbm [thread:$0]  %s155_s14, 512, %s331_s3, [#allocation4], %s259_s0, %s259_s0, %s260_s9  }
 0x10e   :  { %253 = dma.done.wait [#allocation4], 512  }
 0x10f   :  { %254 = vsyncadd [#allocation4], 4294966784 }
 0x110   :  { %164 = vsyncpa [#allocation3], 1 }
 0x111   :  { %165 = vsyncpa [#allocation6], 1 }
 0x112   :  { %166 = vsyncpa [#allocation4], 1 }

</bundles_post_ra>
